<compile_context>
chip_gen: v7x
topology: tpu7x:2x2x1
jax: 0.10.0
libtpu: 0.0.40
codegen_flags: <defaults>
</compile_context>

<pallas_src>
import math

import jax
import jax.numpy as jnp
from jax.experimental import pallas as pl
from jax.experimental.pallas import tpu as pltpu


def _gaussian_taps_py(kernel_size: int, sigma: float):
    """Same construction as GaussianSmoothing.__init__ (dim=1), as Python floats."""
    mean = (kernel_size - 1) / 2.0
    vals = [
        (1.0 / (sigma * math.sqrt(2.0 * math.pi)))
        * math.exp(-(((i - mean) / sigma) ** 2) / 2.0)
        for i in range(kernel_size)
    ]
    s = sum(vals)
    return [v / s for v in vals]


def _make_gauss_kernel(taps):
    """Build a Pallas kernel body with the taps baked in as constants."""
    taps = [float(t) for t in taps]
    K = len(taps)

    def kernel(x_ref, o_ref):
        # x_ref: VMEM (row_tile, L)      f32
        # o_ref: VMEM (row_tile, L_out)  f32  (tail lane-tile store is masked
        #                                      when L_out % 128 != 0)
        l_out = o_ref.shape[-1]
        xv = x_ref[...]                               # single full-tile load
        # Symmetric Gaussian: fold mirrored shifts first (halves VALU muls);
        # the lane shifts themselves run on the XLU slot and hide under HBM.
        # TODO(synk): if a v7x bundle dump shows vrot/vsel saturating for large
        # K, recast as a small banded-Toeplitz matmul on the otherwise-idle MXU.
        acc = None
        for k in range(K // 2):
            term = xv[:, k:k + l_out] + xv[:, K - 1 - k:K - 1 - k + l_out]
            term = taps[k] * term
            acc = term if acc is None else acc + term
        if K % 2 == 1:
            mid = K // 2
            term = taps[mid] * xv[:, mid:mid + l_out]
            acc = term if acc is None else acc + term
        o_ref[...] = acc.astype(o_ref.dtype)

    return kernel


def _round_up(v: int, m: int) -> int:
    return ((v + m - 1) // m) * m


def _cdiv(a: int, b: int) -> int:
    return -(-a // b)


def _choose_tiling(rows: int, l_in: int, l_out: int, itemsize: int = 4,
                   pipeline_budget_bytes: int = 24 * 1024 * 1024):
    """Pick (row_tile, n_steps).

    row_tile is a multiple of 8 (or == rows when rows <= 8), sized so the
    double-buffered input+output blocks (lane widths rounded up to 128) fit
    the pipeline VMEM budget.  The grid is made even (and >=4 when there are
    enough rows) so v7x's two TensorCores stay balanced; this is free on
    v5e/v6e (single TC).  Padding waste is bounded by choosing the tile from
    the step count rather than the other way around.
    """
    if rows <= 8:
        return rows, 1
    rows8 = _round_up(rows, 8)
    lanes = _round_up(l_in, 128) + _round_up(l_out, 128)
    bytes_per_row = 2 * lanes * itemsize          # 2 pipeline buffers each
    max_rt = max(8, (pipeline_budget_bytes // bytes_per_row) // 8 * 8)
    n_steps = _cdiv(rows8, max_rt)
    if rows8 >= 4 * 8:
        n_steps = max(n_steps, 4)
    elif rows8 >= 2 * 8:
        n_steps = max(n_steps, 2)
    if n_steps > 1 and n_steps % 2:
        n_steps += 1
    row_tile = min(_round_up(_cdiv(rows8, n_steps), 8), rows8)
    n_steps = _cdiv(rows, row_tile)
    return row_tile, n_steps


def gaussian_smoothing_1d(x: jnp.ndarray, kernel_size: int, sigma: float) -> jnp.ndarray:
    """x: (N, C, L) float32.  Returns (N, C, L - kernel_size + 1) float32."""
    assert x.dtype == jnp.float32, "kernel tiling/VMEM accounting assumes float32"
    N, C, L = x.shape
    K = int(kernel_size)
    L_out = L - K + 1
    assert L_out > 0, "kernel_size must be <= L"

    taps = _gaussian_taps_py(K, sigma)

    rows = N * C
    row_tile, n_steps = _choose_tiling(rows, L, L_out)
    rows_pad = row_tile * n_steps

    x2 = x.reshape(rows, L)
    if rows_pad != rows:
        # Only the unaligned case pays for a pad pass; aligned shapes go
        # straight into the kernel with zero extra HBM traffic.
        x2 = jnp.pad(x2, ((0, rows_pad - rows), (0, 0)))

    cost = pl.CostEstimate(
        flops=2 * K * rows_pad * L_out,
        transcendentals=0,
        bytes_accessed=rows_pad * (L + L_out) * 4,   # what is actually DMA'd
    )

    out2 = pl.pallas_call(
        _make_gauss_kernel(taps),
        out_shape=jax.ShapeDtypeStruct((rows_pad, L_out), x.dtype),
        grid=(n_steps,),
        in_specs=[pl.BlockSpec((row_tile, L), lambda i: (i, 0))],
        out_specs=pl.BlockSpec((row_tile, L_out), lambda i: (i, 0)),
        compiler_params=pltpu.CompilerParams(
            dimension_semantics=("parallel",),
            vmem_limit_bytes=32 * 1024 * 1024,
        ),
        cost_estimate=cost,
    )(x2)

    if rows_pad != rows:
        out2 = out2[:rows]
    return out2.reshape(N, C, L_out)


if __name__ == "__main__":
    def _ref(xx, K, sigma):
        # Pure-JAX reference of the depthwise valid cross-correlation (every
        # channel uses the identical Gaussian taps, exactly as the module
        # builds its (C, 1, K) weight buffer by repetition).
        taps = jnp.asarray(_gaussian_taps_py(K, sigma), dtype=jnp.float32)
        Lo = xx.shape[-1] - K + 1
        r = jnp.zeros(xx.shape[:-1] + (Lo,), jnp.float32)
        for k in range(K):
            r = r + taps[k] * xx[:, :, k:k + Lo]
        return r

    root_key = jax.random.PRNGKey(0)
    k1, k2 = jax.random.split(root_key)

    # Module config (matches GaussianSmoothing(channels=4, kernel_size=5, sigma=1.0, dim=1)),
    # NCL layout like PyTorch conv1d.
    N, C, L, K, sigma = 2, 4, 128, 5, 1.0
    x = jax.random.normal(k1, (N, C, L), dtype=jnp.float32)
    out = jax.block_until_ready(gaussian_smoothing_1d(x, K, sigma))
    assert out.shape == (N, C, L - K + 1)
    assert jnp.max(jnp.abs(out - _ref(x, K, sigma))) < 1e-5

    # Second shape: rows not a multiple of the tile and L_out % 128 != 0
    # (exercises the row-pad fallback, the masked tail store, and an even K).
    N2, C2, L2, K2, sigma2 = 3, 5, 100, 6, 2.0
    xb = jax.random.normal(k2, (N2, C2, L2), dtype=jnp.float32)
    outb = jax.block_until_ready(gaussian_smoothing_1d(xb, K2, sigma2))
    assert outb.shape == (N2, C2, L2 - K2 + 1)
    assert jnp.max(jnp.abs(outb - _ref(xb, K2, sigma2))) < 1e-5

    print("KERNEL_OK")
</pallas_src>

<mosaic_0001>
module attributes {stable_mosaic.version = 11 : i64} {
  func.func @kernel(%arg0: i32, %arg1: memref<8x128xf32, #tpu.memory_space<vmem>>, %arg2: memref<8x124xf32, #tpu.memory_space<vmem>>) attributes {dimension_semantics = [#tpu.dimension_semantics<parallel>], iteration_bounds = array<i64: 1>, scalar_prefetch = 0 : i64, scratch_operands = 0 : i64, tpu.core_type = #tpu.core_type<tc>, window_params = [{transform_indices = @transform_0, window_bounds = array<i64: 8, 128>}, {transform_indices = @transform_1, window_bounds = array<i64: 8, 124>}]} {
    %c0 = arith.constant 0 : index
    %c0_0 = arith.constant 0 : index
    %0 = vector.load %arg1[%c0, %c0_0] : memref<8x128xf32, #tpu.memory_space<vmem>>, vector<8x128xf32>
    %1 = vector.extract_strided_slice %0 {offsets = [0, 0], sizes = [8, 124], strides = [1, 1]} : vector<8x128xf32> to vector<8x124xf32>
    %2 = vector.extract_strided_slice %0 {offsets = [0, 4], sizes = [8, 124], strides = [1, 1]} : vector<8x128xf32> to vector<8x124xf32>
    %3 = arith.addf %1, %2 : vector<8x124xf32>
    %cst = arith.constant 0.054488685 : f32
    %4 = vector.broadcast %cst : f32 to vector<8x124xf32>
    %5 = arith.mulf %4, %3 : vector<8x124xf32>
    %6 = vector.extract_strided_slice %0 {offsets = [0, 1], sizes = [8, 124], strides = [1, 1]} : vector<8x128xf32> to vector<8x124xf32>
    %7 = vector.extract_strided_slice %0 {offsets = [0, 3], sizes = [8, 124], strides = [1, 1]} : vector<8x128xf32> to vector<8x124xf32>
    %8 = arith.addf %6, %7 : vector<8x124xf32>
    %cst_1 = arith.constant 0.244201347 : f32
    %9 = vector.broadcast %cst_1 : f32 to vector<8x124xf32>
    %10 = arith.mulf %9, %8 : vector<8x124xf32>
    %11 = arith.addf %5, %10 : vector<8x124xf32>
    %12 = vector.extract_strided_slice %0 {offsets = [0, 2], sizes = [8, 124], strides = [1, 1]} : vector<8x128xf32> to vector<8x124xf32>
    %cst_2 = arith.constant 0.402619958 : f32
    %13 = vector.broadcast %cst_2 : f32 to vector<8x124xf32>
    %14 = arith.mulf %13, %12 : vector<8x124xf32>
    %15 = arith.addf %11, %14 : vector<8x124xf32>
    %c0_3 = arith.constant 0 : index
    %c0_4 = arith.constant 0 : index
    %16 = vector.load %arg2[%c0_3, %c0_4] : memref<8x124xf32, #tpu.memory_space<vmem>>, vector<8x124xf32>
    tpu.vector_store %arg2[%c0_3, %c0_4], %15 {strides = array<i32>} : memref<8x124xf32, #tpu.memory_space<vmem>>, vector<8x124xf32>,
    return
  }
  func.func @transform_0(%arg0: i32) -> (i32, i32) {
    %c0_i32 = arith.constant 0 : i32
    %c0_i32_0 = arith.constant 0 : i32
    return %arg0, %c0_i32 : i32, i32
  }
  func.func @transform_1(%arg0: i32) -> (i32, i32) {
    %c0_i32 = arith.constant 0 : i32
    %c0_i32_0 = arith.constant 0 : i32
    return %arg0, %c0_i32 : i32, i32
  }
}

</mosaic_0001>

<bundles_post_ra>
// kernel: tpu_custom_call.1
= control target key start
LH: loop header
LB: loop body
LE: loop exit
PB: predicated region body
PF: predicated region fallthrough
CT: control target
= control target key end

     0   :  { %6 = vsyncpa [#allocation3], 0  ;;  %s153_s0 = inlined_call_operand.hbm [shape: f32[8,128], index: 0, kind: input, shape index: {}]   ;;  %s154_s1 = inlined_call_operand.hbm [shape: f32[8,124], index: 1, kind: output, shape index: {}]  }
   0x1   :  { %7 = vsyncpa [#allocation4], 0  ;;  %s114_s6 = smov [#allocation2]   ;;  %s66_s10 = scalar_lea.hbm %s153_s0, 128 }
   0x2   :  { %s14_s7 = sshll.u32 %s114_s6, 4  ;;  %p67_p0 = scmp.ne.s32.totalorder %s153_s0, %s66_s10  ;;  %s15_s7 = int_to_ptr.vmem [resolvable:$true] %s14_s7 }
   0x3   :  { %p70_p1 = scmp.lt.u32.totalorder %s66_s10, %s153_s0 }
   0x5   :  { %p72_p2 = pnand %p70_p1, %p67_p0 }
   0x7   :  { %75 = shalt.err (!%p72_p2)
}
   0x8   :  { %s76_s15 = scalar_lea.vmem %s15_s7, 128  ;;  %p81_p4 = scmp.lt.s32.totalorder %s15_s7, %s15_s7 }
   0x9   :  { %p77_p3 = scmp.ne.s32.totalorder %s15_s7, %s76_s15  ;;  %p82_p5 = scmp.lt.s32.totalorder %s76_s15, %s76_s15 }
   0xb   :  { %p83_p6 = por %p82_p5, %p81_p4 }
   0xd   :  { %p84_p7 = pnand %p83_p6, %p77_p3 }
   0xf   :  { %87 = shalt.err (!%p84_p7)
}
  0x10   :  { %17 = dma.hbm_to_vmem [thread:$0]  %s153_s0, 128, %s15_s7, [#allocation3]  }
  0x11   :  { %110 = dma.done.wait [#allocation3], 128  }
  0x12   :  { %111 = vsyncadd [#allocation3], 4294967168  ;;  %v21_v0 = vld [vmem:[#allocation2] sm:$0xff]  ;;  %s115_s18 = smov 126   ;;  %s116_s19 = smov 124   ;;  %vm44_vm0 = vcmask 1014784  }
  0x13   :  { %28 = vrot.lane.b32.xlu0 %v21_v0, %s115_s18  ;;  %s117_s20 = smov 127   ;;  %v38_v4 = vmul.f32 0.40261996, %v21_v0  ;;  %s118_s21 = smov [#allocation5]  }
  0x14   :  { %s52_s0 = sshll.u32 %s118_s21, 4  ;;  %s53_s0 = int_to_ptr.vmem [resolvable:$true] %s52_s0 }
  0x15   :  { %s88_s22 = scalar_lea.vmem %s53_s0, 128  ;;  %p93_p9 = scmp.lt.s32.totalorder %s53_s0, %s53_s0 }
  0x16   :  { %p89_p8 = scmp.ne.s32.totalorder %s53_s0, %s88_s22  ;;  %p94_p10 = scmp.lt.s32.totalorder %s88_s22, %s88_s22 }
  0x17   :  { %23 = vrot.lane.b32.xlu0 %v21_v0, %s116_s19 }
  0x18   :  { %p95_p11 = por %p94_p10, %p93_p9 }
  0x1a   :  { %p96_p12 = pnand %p95_p11, %p89_p8 }
  0x85   :  { %v29_v1 = vpop.permute.xlu0 %28 }
  0x86   :  { %v31_v2 = vadd.f32 %v29_v1, %v21_v0 }
  0x88   :  { %v32_v3 = vmul.f32 0.24420135, %v31_v2 }
  0x89   :  { %v24_v5 = vpop.permute.xlu0 %23 }
  0x8a   :  { %34 = vrot.lane.b32.xlu1 %v32_v3, %s117_s20  ;;  %v26_v6 = vadd.f32 %v24_v5, %v21_v0 }
  0x8c   :  { %v27_v7 = vmul.f32 0.054488685, %v26_v6 }
  0x8e   :  { %40 = vrot.lane.b32.xlu1 %v38_v4, %s115_s18 }
  0xfc   :  { %v35_v8 = vpop.permute.xlu1 %34 }
  0xfd   :  { %v37_v9 = vadd.f32 %v35_v8, %v27_v7 }
 0x100   :  { %v41_v10 = vpop.permute.xlu1 %40 }
 0x101   :  { %v43_v11 = vadd.f32 %v41_v10, %v37_v9 }
 0x103   :  { %45 = vst.msk [vmem:[#allocation5] sm:$0xff] %vm44_vm0, %v43_v11 }
 0x104   :  { %99 = shalt.err (!%p96_p12)
}
 0x105   :  { %s100_s25 = scalar_lea.hbm %s154_s1, 128 }
 0x106   :  { %p101_p13 = scmp.ne.s32.totalorder %s154_s1, %s100_s25  ;;  %p104_p0 = scmp.lt.u32.totalorder %s100_s25, %s154_s1 }
 0x108   :  { %p106_p1 = pnand %p104_p0, %p101_p13 }
 0x10a   :  { %109 = shalt.err (!%p106_p1)
}
 0x10b   :  { %55 = dma.vmem_to_hbm [thread:$0]  %s53_s0, 128, %s154_s1, [#allocation4]  }
 0x10c   :  { %112 = dma.done.wait [#allocation4], 128  }
 0x10d   :  { %113 = vsyncadd [#allocation4], 4294967168 }
 0x10e   :  { %59 = vsyncpa [#allocation3], 1 }
 0x10f   :  { %60 = vsyncpa [#allocation4], 1 }

</bundles_post_ra>
